<compile_context>
chip_gen: v6e
topology: v6e:2x2x1
jax: 0.10.0
libtpu: 0.0.40
codegen_flags: <defaults>
</compile_context>

<pallas_src>
import math

import jax
import jax.numpy as jnp
from jax import lax
from jax.experimental import pallas as pl
from jax.experimental.pallas import tpu as pltpu


# ----------------------------- Pallas kernel --------------------------------

def _time_embedding_kernel(t_ref, tw1_ref, w2_ref, b2_ref, o_ref):
    # t_ref   : (Bblk, 1) int32
    # tw1_ref : (T, dim)        precomputed  table @ W1 + b1   (frozen-weight fold)
    # w2_ref  : (dim, dim)      b2_ref: (1, dim) f32
    # o_ref   : (Bblk, dim) f32
    t = t_ref[...]                                   # (Bblk, 1) int32
    bblk = t.shape[0]
    T = tw1_ref.shape[0]

    # Fused embedding gather + Linear1: one-hot(t) @ (table@W1+b1) in a single MXU pass.
    # One-hot built directly in the matmul dtype (no extra f32 temp / cast).
    iota = lax.broadcasted_iota(jnp.int32, (bblk, T), 1)
    onehot = (t == iota).astype(tw1_ref.dtype)       # (Bblk, T)
    h = jnp.dot(onehot, tw1_ref[...],
                preferred_element_type=jnp.float32)  # (Bblk, dim) f32

    # Swish in f32 (sigmoid on the EUP).
    h = h * jax.nn.sigmoid(h)

    # Linear 2 (+ bias), f32 accumulation.
    out = jnp.dot(h.astype(w2_ref.dtype), w2_ref[...],
                  preferred_element_type=jnp.float32) + b2_ref[...]
    o_ref[...] = out.astype(o_ref.dtype)


# ------------------------------ Wrapper --------------------------------------

def _round_up(x, m):
    return ((x + m - 1) // m) * m


def _choose_block_b(B):
    # Large tiles amortize the ~0.35 us/grid-step overhead, but keep >= 2 tiles so the
    # "parallel" batch axis can shard across v7x's 2 TensorCores.
    half = _round_up(max(1, (B + 1) // 2), 8)
    return max(8, min(1024, half))


def time_embedding_forward(t, table, params, *, block_b=None, small_batch_max=256):
    """Full TimeEmbedding.forward with the frozen table folded through Linear1.

    Small batches (B <= small_batch_max): single invocation, whole-array VMEM refs,
    no grid.  Larger batches: 1-D "parallel" grid over large batch tiles with the
    folded table / W2 resident in VMEM (constant index maps).
    """
    w1, b1, w2, b2 = params
    B = int(t.shape[0])
    T, d_model = table.shape
    dim = w1.shape[1]

    # One-time frozen-weight fold (exact: the gather is pure row selection).
    # Computed in f32, then stored in the matmul dtype (bf16 for the fast MXU path).
    gather_dtype = w2.dtype
    tw1 = (table.astype(jnp.float32) @ w1.astype(jnp.float32)
           + b1.reshape(1, dim).astype(jnp.float32)).astype(gather_dtype)   # (T, dim)
    b2_2d = b2.reshape(1, dim).astype(jnp.float32)

    t2d = t.astype(jnp.int32).reshape(B, 1)

    def cost(bsz):
        flops = 2 * bsz * (T * dim + dim * dim)
        bytes_accessed = (tw1.size * tw1.dtype.itemsize
                          + w2.size * w2.dtype.itemsize
                          + b2_2d.size * 4 + bsz * 4 + bsz * dim * 4)
        return pl.CostEstimate(flops=flops, transcendentals=bsz * dim,
                               bytes_accessed=int(bytes_accessed))

    out_dtype = jnp.float32
    args = (t2d, tw1, w2, b2_2d)

    if block_b is None and B <= small_batch_max:
        # No grid: avoids the auto-pipeline's double-buffered weights and per-step
        # bookkeeping a grid=(1,) launch would pay for nothing.
        vmem = pl.BlockSpec(memory_space=pltpu.MemorySpace.VMEM)
        return pl.pallas_call(
            _time_embedding_kernel,
            out_shape=jax.ShapeDtypeStruct((B, dim), out_dtype),
            in_specs=[vmem] * len(args),
            out_specs=vmem,
            cost_estimate=cost(B),
        )(*args)

    bb = _round_up(block_b, 8) if block_b is not None else _choose_block_b(B)
    nb = pl.cdiv(B, bb)
    Bp = nb * bb
    if Bp != B:
        # Pad so every tile (and every output store) is full-width; padded rows select
        # row 0 of the table and are sliced off below.
        t2d = jnp.pad(t2d, ((0, Bp - B), (0, 0)))

    # VMEM budget: resident (constant-index-map) operands are still double-buffered by
    # Pallas.  Raise the scoped limit only when the default 32 MiB would not fit
    # (matters for large dim on v7x's 64 MiB physical VMEM).
    resident_bytes = 2 * (tw1.size * tw1.dtype.itemsize
                          + w2.size * w2.dtype.itemsize
                          + b2_2d.size * 4)
    per_tile_bytes = 2 * (bb * 4 + bb * dim * 4)
    needed = resident_bytes + per_tile_bytes + (4 << 20)
    cp_kwargs = dict(dimension_semantics=("parallel",))
    if needed > (32 << 20):
        cp_kwargs["vmem_limit_bytes"] = int(min(needed, 64 << 20))

    const2 = lambda i: (0, 0)
    out = pl.pallas_call(
        _time_embedding_kernel,
        out_shape=jax.ShapeDtypeStruct((Bp, dim), out_dtype),
        grid=(nb,),
        in_specs=[
            pl.BlockSpec((bb, 1), lambda i: (i, 0)),    # t       (row tile)
            pl.BlockSpec((T, dim), const2),             # table@W1+b1 (resident)
            pl.BlockSpec((dim, dim), const2),           # w2          (resident)
            pl.BlockSpec((1, dim), const2),             # b2
        ],
        out_specs=pl.BlockSpec((bb, dim), lambda i: (i, 0)),
        compiler_params=pltpu.CompilerParams(**cp_kwargs),
        cost_estimate=cost(Bp),
    )(t2d, tw1, w2, b2_2d)
    return out[:B] if Bp != B else out


# ----------------------------- Module setup ---------------------------------

def make_sinusoidal_table(T, d_model):
    """Exactly mirrors the PyTorch __init__ construction of the embedding table."""
    assert d_model % 2 == 0
    emb = jnp.arange(0, d_model, 2, dtype=jnp.float32) / d_model * math.log(10000.0)
    emb = jnp.exp(-emb)                                     # (d_model // 2,)
    pos = jnp.arange(T, dtype=jnp.float32)                  # (T,)
    emb = pos[:, None] * emb[None, :]                       # (T, d_model // 2)
    emb = jnp.stack([jnp.sin(emb), jnp.cos(emb)], axis=-1)  # (T, d_model//2, 2)
    return emb.reshape(T, d_model)                          # (T, d_model)


def init_params(key, d_model, dim):
    """Deterministic synthetic parameters (same shapes as the two nn.Linear layers)."""
    k1, k2, k3, k4 = jax.random.split(key, 4)
    # Stored as (in, out) so the math is x @ W  (== PyTorch x @ W.T).
    w1 = jax.random.normal(k1, (d_model, dim), jnp.float32) * (1.0 / math.sqrt(d_model))
    b1 = jax.random.normal(k2, (1, dim), jnp.float32) * 0.01
    w2 = jax.random.normal(k3, (dim, dim), jnp.float32) * (1.0 / math.sqrt(dim))
    b2 = jax.random.normal(k4, (1, dim), jnp.float32) * 0.01
    return w1, b1, w2, b2


# Pure-JAX reference (un-folded, mirrors the PyTorch module) for sanity checks.
def time_embedding_reference(t, table, params):
    w1, b1, w2, b2 = params
    emb = jnp.take(table, t, axis=0)
    h = emb @ w1.astype(jnp.float32) + b1
    h = h * jax.nn.sigmoid(h)
    return h @ w2.astype(jnp.float32) + b2


# --------------------------------- Main --------------------------------------

if __name__ == "__main__":
    # Lane-dense feature dims (multiples of 128) so stores are full-width vst.
    T, d_model, dim = 16, 128, 128

    key = jax.random.PRNGKey(0)
    k_t, k_t2, k_p = jax.random.split(key, 3)

    table = make_sinusoidal_table(T, d_model)
    params = init_params(k_p, d_model, dim)

    # Tolerances are loose enough to cover bf16-pass matmul precision on either the
    # XLA reference side or the in-kernel MXU side.
    TOL = dict(atol=2e-2, rtol=2e-2)

    # 1) Small batch: single-shot (no-grid) kernel, f32 weights.
    B = 8
    t = jax.random.randint(k_t, (B,), 0, T, dtype=jnp.int32)
    out = jax.block_until_ready(time_embedding_forward(t, table, params))
    ref = time_embedding_reference(t, table, params)
    assert out.shape == (B, dim)
    assert jnp.allclose(out, ref, **TOL)

    # 2) Larger (ragged) batch: batch-tiled "parallel" grid path, auto block_b (>= 2
    #    tiles so both v7x TensorCores get work), padded last tile sliced off.
    B2 = 520
    t2 = jax.random.randint(k_t2, (B2,), 0, T, dtype=jnp.int32)
    out2 = jax.block_until_ready(time_embedding_forward(t2, table, params))
    ref2 = time_embedding_reference(t2, table, params)
    assert out2.shape == (B2, dim)
    assert jnp.allclose(out2, ref2, **TOL)

    # 3) bf16 fast path: folded table + W2 in bf16 (MXU bf16 rate), f32 Swish/bias/acc.
    w1, b1, w2, b2 = params
    params_bf16 = (w1, b1, w2.astype(jnp.bfloat16), b2)
    out_bf16 = jax.block_until_ready(time_embedding_forward(t, table, params_bf16))
    assert jnp.allclose(out_bf16, ref, atol=5e-2, rtol=5e-2)

    print("KERNEL_OK")
</pallas_src>

<mosaic_0001>
module attributes {stable_mosaic.version = 11 : i64} {
  func.func @_time_embedding_kernel(%arg0: memref<8x1xi32, #tpu.memory_space<vmem>>, %arg1: memref<16x128xf32, #tpu.memory_space<vmem>>, %arg2: memref<128x128xf32, #tpu.memory_space<vmem>>, %arg3: memref<1x128xf32, #tpu.memory_space<vmem>>, %arg4: memref<8x128xf32, #tpu.memory_space<vmem>>) attributes {dimension_semantics = [], scalar_prefetch = 0 : i64, scratch_operands = 0 : i64, tpu.core_type = #tpu.core_type<tc>} {
    %c0 = arith.constant 0 : index
    %c0_0 = arith.constant 0 : index
    %0 = vector.load %arg0[%c0, %c0_0] : memref<8x1xi32, #tpu.memory_space<vmem>>, vector<8x1xi32>
    %1 = tpu.iota {dimensions = array<i32: 1>} : vector<8x16xi32>
    %2 = vector.broadcast %0 : vector<8x1xi32> to vector<8x16xi32>
    %3 = arith.cmpi eq, %2, %1 : vector<8x16xi32>
    %4 = arith.extui %3 : vector<8x16xi1> to vector<8x16xi32>
    %5 = arith.sitofp %4 : vector<8x16xi32> to vector<8x16xf32>
    %c0_1 = arith.constant 0 : index
    %c0_2 = arith.constant 0 : index
    %6 = vector.load %arg1[%c0_1, %c0_2] : memref<16x128xf32, #tpu.memory_space<vmem>>, vector<16x128xf32>
    %cst = arith.constant dense<0.000000e+00> : vector<8x128xf32>
    %7 = tpu.matmul %5, %6, %cst {dimension_numbers = #tpu.dot_dimension_numbers<[1], [0], [0], [1], [0, 0, 1, 1], [], []>} : vector<8x16xf32>, vector<16x128xf32>, vector<8x128xf32> -> vector<8x128xf32>
    %8 = arith.negf %7 : vector<8x128xf32>
    %9 = math.exp %8 : vector<8x128xf32>
    %cst_3 = arith.constant 1.000000e+00 : f32
    %10 = vector.broadcast %cst_3 : f32 to vector<8x128xf32>
    %11 = arith.addf %10, %9 : vector<8x128xf32>
    %12 = arith.divf %10, %11 : vector<8x128xf32>
    %13 = arith.mulf %7, %12 : vector<8x128xf32>
    %c0_4 = arith.constant 0 : index
    %c0_5 = arith.constant 0 : index
    %14 = vector.load %arg2[%c0_4, %c0_5] : memref<128x128xf32, #tpu.memory_space<vmem>>, vector<128x128xf32>
    %cst_6 = arith.constant dense<0.000000e+00> : vector<8x128xf32>
    %15 = tpu.matmul %13, %14, %cst_6 {dimension_numbers = #tpu.dot_dimension_numbers<[1], [0], [0], [1], [0, 0, 1, 1], [], []>} : vector<8x128xf32>, vector<128x128xf32>, vector<8x128xf32> -> vector<8x128xf32>
    %c0_7 = arith.constant 0 : index
    %c0_8 = arith.constant 0 : index
    %16 = vector.load %arg3[%c0_7, %c0_8] : memref<1x128xf32, #tpu.memory_space<vmem>>, vector<1x128xf32>
    %17 = vector.broadcast %16 : vector<1x128xf32> to vector<8x128xf32>
    %18 = arith.addf %15, %17 : vector<8x128xf32>
    %c0_9 = arith.constant 0 : index
    %c0_10 = arith.constant 0 : index
    %19 = vector.load %arg4[%c0_9, %c0_10] : memref<8x128xf32, #tpu.memory_space<vmem>>, vector<8x128xf32>
    tpu.vector_store %arg4[%c0_9, %c0_10], %18 {strides = array<i32>} : memref<8x128xf32, #tpu.memory_space<vmem>>, vector<8x128xf32>,
    return
  }
}

</mosaic_0001>

<bundles_post_ra>
// kernel: tpu_custom_call.1
= control target key start
LH: loop header
LB: loop body
LE: loop exit
PB: predicated region body
PF: predicated region fallthrough
CT: control target
= control target key end

     0   :  { %9 = vsyncpa [#allocation3], 0  ;;  %s462_s0 = inlined_call_operand.vmem [shape: s32[8,1], index: 0, kind: input, shape index: {}]   ;;  %s463_s1 = inlined_call_operand.hbm [shape: f32[16,128], index: 1, kind: input, shape index: {}]   ;;  %s464_s2 = inlined_call_operand.hbm [shape: f32[128,128], index: 2, kind: input, shape index: {}]   ;;  %s465_s3 = inlined_call_operand.vmem [shape: f32[1,128], index: 3, kind: input, shape index: {}]   ;;  %s466_s4 = inlined_call_operand.hbm [shape: f32[8,128], index: 4, kind: output, shape index: {}]  }
   0x1   :  { %10 = vsyncpa [#allocation6], 0 }
   0x2   :  { %11 = vsyncpa [#allocation4], 0  ;;  %s393_s15 = smov [#allocation2]  }
   0x3   :  { %s19_s16 = sshll.u32 %s393_s15, 4  ;;  %s20_s16 = int_to_ptr.vmem [resolvable:$true] %s19_s16 }
   0x4   :  { %s335_s17 = scalar_lea.vmem %s20_s16, 256  ;;  %p340_p1 = scmp.lt.s32.totalorder %s20_s16, %s20_s16 }
   0x5   :  { %p336_p0 = scmp.ne.s32.totalorder %s20_s16, %s335_s17  ;;  %p341_p2 = scmp.lt.s32.totalorder %s335_s17, %s335_s17 }
   0x7   :  { %p342_p3 = por %p341_p2, %p340_p1 }
   0x9   :  { %p343_p4 = pnand %p342_p3, %p336_p0 }
   0xb   :  { %346 = shalt.err (!%p343_p4)
}
   0xc   :  { %s394_s18 = smov 128   ;;  %s395_s19 = smov 8  }
   0xd   :  { %25 = dma.hbm_to_vmem [thread:$0]  %s463_s1, 256, %s20_s16, [#allocation3], %s394_s18, %s394_s18, %s395_s19  }
   0xe   :  { %s396_s22 = smov [#allocation5]  }
   0xf   :  { %s31_s23 = sshll.u32 %s396_s22, 4  ;;  %s32_s23 = int_to_ptr.vmem [resolvable:$true] %s31_s23 }
  0x10   :  { %s355_s24 = scalar_lea.vmem %s32_s23, 2048  ;;  %p360_p6 = scmp.lt.s32.totalorder %s32_s23, %s32_s23 }
  0x11   :  { %p356_p5 = scmp.ne.s32.totalorder %s32_s23, %s355_s24  ;;  %p361_p7 = scmp.lt.s32.totalorder %s355_s24, %s355_s24 }
  0x13   :  { %p362_p8 = por %p361_p7, %p360_p6 }
  0x15   :  { %p363_p9 = pnand %p362_p8, %p356_p5 }
  0x17   :  { %366 = shalt.err (!%p363_p9)
}
  0x18   :  { %37 = dma.hbm_to_vmem [thread:$0]  %s464_s2, 2048, %s32_s23, [#allocation6], %s394_s18, %s394_s18, %s395_s19  }
  0x19   :  { %387 = dma.done.wait [#allocation3], 256  }
  0x1a   :  { %388 = vsyncadd [#allocation3], 4294967040 }
  0x1b   :  { %389 = dma.done.wait [#allocation6], 2048  }
  0x1c   :  { %390 = vsyncadd [#allocation6], 4294965248  ;;  %v397_v0 = vmov 0   ;;  %v398_v1 = vmov 0.0   ;;  %vm399_vm0 = vmmov 0   ;;  %v46_v2 = vld [vmem:[%s462_s0] sm:$0xff]  ;;  %v47_v5 = vlaneseq }
  0x1d   :  { %322 = vset.pattern.permute.xlu0 %v397_v0  ;;  %272 = vmatprep.subr.mxu0 %v398_v1  ;;  %v56_v3 = vld [vmem:[#allocation2 + $0x8] sm:$0xff]  ;;  %v55_v4 = vld [vmem:[#allocation2] sm:$0xff]  ;;  %vm57_vm1 = vcmask 130048   ;;  %v151_v11 = vld [vmem:[#allocation5 + $0x68] sm:$0xff]  ;;  %s400_s28 = smov [#allocation7]  }
  0x1e   :  { %279 = vmatprep.subr.mxu1 %v398_v1  ;;  %276 = vmatprep.mubr.msk.f32.mxu0 %vm399_vm0, %v398_v1  ;;  %v48_v6 = vand.u32 127, %v47_v5  ;;  %v153_v9 = vld [vmem:[#allocation5 + $0x78] sm:$0xff]  ;;  %v152_v10 = vld [vmem:[#allocation5 + $0x70] sm:$0xff]  ;;  %v150_v12 = vld [vmem:[#allocation5 + $0x60] sm:$0xff]  ;;  %s238_s29 = sshll.u32 %s400_s28, 4  ;;  %s239_s29 = int_to_ptr.vmem [resolvable:$true] %s238_s29 }
  0x1f   :  { %311 = vmatprep.mubr.msk.f32.mxu1 %vm399_vm0, %v398_v1  ;;  %50 = vperm.xlu0 %322, %v46_v2   ;;  %v149_v13 = vld [vmem:[#allocation5 + $0x58] sm:$0xff]  ;;  %v148_v14 = vld [vmem:[#allocation5 + $0x50] sm:$0xff]  ;;  %v147_v15 = vld [vmem:[#allocation5 + $0x48] sm:$0xff]  ;;  %s367_s30 = scalar_lea.vmem %s239_s29, 128  ;;  %p372_p11 = scmp.lt.s32.totalorder %s239_s29, %s239_s29 }
  0x20   :  { %273 = vmatpush3.msra.mxu0 %v56_v3  ;;  %280 = vmatpush3.msra.mxu1 %v153_v9  ;;  %v146_v16 = vld [vmem:[#allocation5 + $0x40] sm:$0xff]  ;;  %v145_v17 = vld [vmem:[#allocation5 + $0x38] sm:$0xff]  ;;  %v144_v18 = vld [vmem:[#allocation5 + $0x30] sm:$0xff]  ;;  %p368_p10 = scmp.ne.s32.totalorder %s239_s29, %s367_s30  ;;  %p373_p12 = scmp.lt.s32.totalorder %s367_s30, %s367_s30 }
  0x21   :  { %274 = vmatprep.subr.mxu0 %v398_v1  ;;  %281 = vmatprep.subr.mxu1 %v398_v1  ;;  %v143_v19 = vld [vmem:[#allocation5 + $0x28] sm:$0xff]  ;;  %v142_v20 = vld [vmem:[#allocation5 + $0x20] sm:$0xff]  ;;  %v141_v21 = vld [vmem:[#allocation5 + $0x18] sm:$0xff] }
  0x22   :  { %275 = vmatpush3.msra.mxu0 %v55_v4  ;;  %282 = vmatpush3.msra.mxu1 %v152_v10  ;;  %v140_v22 = vld [vmem:[#allocation5 + $0x10] sm:$0xff]  ;;  %v139_v23 = vld [vmem:[#allocation5 + $0x8] sm:$0xff]  ;;  %v138_v24 = vld [vmem:[#allocation5] sm:$0xff]  ;;  %p374_p13 = por %p373_p12, %p372_p11 }
  0x23   :  { %283 = vmatprep.subr.mxu1 %v398_v1  ;;  %v251_v32 = vld [vmem:[%s465_s3] ss:$0 sm:$0xff] }
  0x24   :  { %284 = vmatpush3.msra.mxu1 %v151_v11  ;;  %p375_p0 = pnand %p374_p13, %p368_p10 }
  0x25   :  { %285 = vmatprep.subr.mxu1 %v398_v1 }
  0x26   :  { %286 = vmatpush3.msra.mxu1 %v150_v12 }
  0x27   :  { %287 = vmatprep.subr.mxu1 %v398_v1 }
  0x28   :  { %288 = vmatpush3.msra.mxu1 %v149_v13 }
  0x29   :  { %289 = vmatprep.subr.mxu1 %v398_v1 }
  0x2a   :  { %290 = vmatpush3.msra.mxu1 %v148_v14 }
  0x2b   :  { %291 = vmatprep.subr.mxu1 %v398_v1 }
  0x2c   :  { %292 = vmatpush3.msra.mxu1 %v147_v15 }
  0x2d   :  { %293 = vmatprep.subr.mxu1 %v398_v1 }
  0x2e   :  { %294 = vmatpush3.msra.mxu1 %v146_v16 }
  0x2f   :  { %295 = vmatprep.subr.mxu1 %v398_v1 }
  0x30   :  { %296 = vmatpush3.msra.mxu1 %v145_v17 }
  0x31   :  { %297 = vmatprep.subr.mxu1 %v398_v1 }
  0x32   :  { %298 = vmatpush3.msra.mxu1 %v144_v18 }
  0x33   :  { %299 = vmatprep.subr.mxu1 %v398_v1 }
  0x34   :  { %300 = vmatpush3.msra.mxu1 %v143_v19 }
  0x35   :  { %301 = vmatprep.subr.mxu1 %v398_v1 }
  0x36   :  { %302 = vmatpush3.msra.mxu1 %v142_v20 }
  0x37   :  { %303 = vmatprep.subr.mxu1 %v398_v1 }
  0x38   :  { %304 = vmatpush3.msra.mxu1 %v141_v21 }
  0x39   :  { %305 = vmatprep.subr.mxu1 %v398_v1 }
  0x3a   :  { %306 = vmatpush3.msra.mxu1 %v140_v22 }
  0x3b   :  { %307 = vmatprep.subr.mxu1 %v398_v1 }
  0x3c   :  { %308 = vmatpush3.msra.mxu1 %v139_v23 }
  0x3d   :  { %309 = vmatprep.subr.mxu1 %v398_v1 }
  0x3e   :  { %310 = vmatpush3.msra.mxu1 %v138_v24 }
  0x9a   :  { %v51_v7 = vpop.permute.xlu0 %50 }
  0x9b   :  { %vm52_vm2 = vcmp.eq.s32.totalorder %v51_v7, %v48_v6 }
  0x9c   :  { %v248_v8 = vsel %vm52_vm2, 1.0, %v398_v1 }
  0x9d   :  { %277 = vmatmul.mubr.msk.f32.vlgmr.msra.gmra.mxu0 %vm57_vm1, %v248_v8 }
 0x15d   :  { %v127_v25 = vpop.f32.mrf.mxu0 }
 0x15e   :  { %v250_v26 = vmul.f32 -1.442695, %v127_v25 }
 0x15f   :  { %v278_v27 = vpop.f32.mrf.mxu0 }
 0x160   :  { %323 = vpow2.f32 %v250_v26 }
 0x16d   :  { %v324_v28 = vpop.eup %323 }
 0x16e   :  { %v134_v29 = vadd.f32 1.0, %v324_v28 }
 0x170   :  { %325 = vrcp.f32 %v134_v29 }
 0x17d   :  { %v326_v30 = vpop.eup %325 }
 0x17e   :  { %v137_v31 = vmul.f32 %v326_v30, %v127_v25 }
 0x180   :  { %312 = vmatmul.mubr.f32.vlgmr.msra.gmra.mxu1 %v137_v31 }
 0x240   :  { %v227_v33 = vpop.f32.mrf.mxu1 }
 0x241   :  { %v228_v34 = vadd.f32 %v251_v32, %v227_v33 }
 0x242   :  { %v313_v35 = vpop.f32.mrf.mxu1 }
 0x243   :  { %231 = vst [vmem:[#allocation7] sm:$0xff] %v228_v34 }
 0x244   :  { %378 = shalt.err (!%p375_p0)
}
 0x245   :  { %241 = dma.vmem_to_hbm [thread:$0]  %s239_s29, 128, %s466_s4, [#allocation4]  }
 0x246   :  { %391 = dma.done.wait [#allocation4], 128  }
 0x247   :  { %392 = vsyncadd [#allocation4], 4294967168 }
 0x248   :  { %245 = vsyncpa [#allocation3], 1 }
 0x249   :  { %246 = vsyncpa [#allocation6], 1 }
 0x24a   :  { %247 = vsyncpa [#allocation4], 1 }

</bundles_post_ra>
